<compile_context>
chip_gen: v6e
topology: v6e:2x2x1
jax: 0.10.0
libtpu: 0.0.40
codegen_flags: <defaults>
</compile_context>

<pallas_src>
import functools

import jax
import jax.numpy as jnp
from jax import lax
from jax.experimental import pallas as pl
from jax.experimental.pallas import tpu as pltpu

PRELU_ALPHA = 0.25   # nn.PReLU() default init (single shared parameter)
EPS = 1e-8           # GroupNorm eps used by the module (eps=1e-08)

# MXU input dtype.  float32 keeps exact parity with the PyTorch reference;
# set to jnp.bfloat16 on v6e/v7x to halve matmul-input bytes (accumulation
# stays float32 via preferred_element_type).  Elementwise math stays f32
# (v5e VPU/EUP have no bf16 path).
MATMUL_DTYPE = jnp.float32


def _mxu_dot(a, b):
    return jnp.dot(a.astype(MATMUL_DTYPE), b.astype(MATMUL_DTYPE),
                   preferred_element_type=jnp.float32)


def _prelu(x):
    return jnp.where(x >= 0, x, PRELU_ALPHA * x)


def _groupnorm(x, gamma, beta):
    """GroupNorm(1, C): normalize jointly over (time, channels) per sample."""
    mean = jnp.mean(x)
    var = jnp.mean((x - mean) * (x - mean))            # biased, like PyTorch
    return (x - mean) * lax.rsqrt(var + EPS) * gamma + beta


# --------------------------- Pallas kernels ---------------------------------

def _encoder_kernel(xf_ref, encw_ref, lnvec_ref, bnw_ref, bnb_ref,
                    enc_ref, state_ref):
    """Fused: in-VMEM unfold -> Conv1d(1,N,L)+ReLU -> GroupNorm(1,N) -> 1x1
    bottleneck.  Also initializes the packed running state [out | skip=0]."""
    K = enc_ref.shape[0]
    Sc = state_ref.shape[1] - bnw_ref.shape[1]
    xf = xf_ref[...].astype(jnp.float32)                       # [K+1, hop]
    # 50%-overlap frames from two shifted views (no HBM gather, no 2x copy).
    frames = jnp.concatenate([xf[:-1, :], xf[1:, :]], axis=1)  # [K, L]
    enc = jnp.maximum(_mxu_dot(frames, encw_ref[...]), 0.0)    # [K, N]
    enc_ref[...] = enc
    h = _groupnorm(enc, lnvec_ref[0:1, :], lnvec_ref[1:2, :])
    out = _mxu_dot(h, bnw_ref[...]) + bnb_ref[...]             # [K, B]
    state_ref[...] = jnp.concatenate(
        [out, jnp.zeros((K, Sc), jnp.float32)], axis=1)        # [K, B+Sc]


def _tcn_block_kernel(d, state_ref, w1_ref, wd_ref, wrs_ref, hvec_ref,
                      brs_ref, o_ref):
    """One fused TCN block:
       1x1 -> PReLU -> gLN -> depthwise dilated conv -> PReLU -> gLN ->
       merged res/skip 1x1 ([H, B+Sc]) -> accumulate into [out | skip]."""
    K = state_ref.shape[0]
    B, H = w1_ref.shape
    P = wd_ref.shape[0]
    state = state_ref[...]                                     # [K, B+Sc]
    x = state[:, :B]

    # conv1d(B, H, 1) + PReLU + GroupNorm(1, H)
    h1 = _mxu_dot(x, w1_ref[...]) + hvec_ref[0:1, :]
    h1 = _prelu(h1)
    h1 = _groupnorm(h1, hvec_ref[1:2, :], hvec_ref[2:3, :])

    # Depthwise dilated conv (groups=H), padding=d.  Matches the reference,
    # whose residual add only type-checks for P == 3 ("same" output length).
    zpad = jnp.zeros((d, H), jnp.float32)
    h1p = jnp.concatenate([zpad, h1, zpad], axis=0)            # [K + 2d, H]
    h2 = jnp.zeros((K, H), jnp.float32)
    for k in range(P):                                         # static taps
        h2 = h2 + h1p[k * d:k * d + K, :] * wd_ref[k:k + 1, :]
    # TODO(synk): express the taps via pltpu.roll (XLU) + edge masks instead
    # of unaligned sublane-offset slices once validated at full sizes.
    h2 = _prelu(h2 + hvec_ref[3:4, :])
    h2 = _groupnorm(h2, hvec_ref[4:5, :], hvec_ref[5:6, :])

    # Merged residual/skip projection, accumulated straight into the state.
    comb = _mxu_dot(h2, wrs_ref[...]) + brs_ref[...]           # [K, B+Sc]
    o_ref[...] = state + comb


def _tail_kernel(C, B, state_ref, enc_ref, ow_ref, ob_ref, dw_ref, o_ref):
    """Fused: PReLU + Conv1d(Sc, N*C, 1) + sigmoid masks + enc*mask + decoder
    frame projection.  The [C, K, N] masked tensor never hits HBM."""
    K, N = enc_ref.shape
    skip = _prelu(state_ref[...][:, B:])                       # [K, Sc]
    sep = _mxu_dot(skip, ow_ref[...]) + ob_ref[...]            # [K, N*C]
    enc = enc_ref[...]
    outs = []
    for c in range(C):
        mask = jax.nn.sigmoid(sep[:, c * N:(c + 1) * N])       # [K, N]
        outs.append(_mxu_dot(enc * mask, dw_ref[...]))         # [K, L]
    o_ref[...] = jnp.concatenate(outs, axis=1)                 # [K, C*L]


# --------------------------- pallas_call wrappers ----------------------------

def encoder_bottleneck(xf, enc_w, ln_vec, bn_w, bn_b, Sc):
    M, K1, hop = xf.shape
    K = K1 - 1
    L, N = enc_w.shape
    Bc = bn_w.shape[1]
    return pl.pallas_call(
        _encoder_kernel,
        out_shape=(jax.ShapeDtypeStruct((M, K, N), jnp.float32),
                   jax.ShapeDtypeStruct((M, K, Bc + Sc), jnp.float32)),
        grid=(M,),
        in_specs=[
            pl.BlockSpec((None, K1, hop), lambda m: (m, 0, 0)),
            pl.BlockSpec((L, N), lambda m: (0, 0)),
            pl.BlockSpec((2, N), lambda m: (0, 0)),
            pl.BlockSpec((N, Bc), lambda m: (0, 0)),
            pl.BlockSpec((1, Bc), lambda m: (0, 0)),
        ],
        out_specs=(pl.BlockSpec((None, K, N), lambda m: (m, 0, 0)),
                   pl.BlockSpec((None, K, Bc + Sc), lambda m: (m, 0, 0))),
        compiler_params=pltpu.CompilerParams(dimension_semantics=("parallel",)),
    )(xf, enc_w, ln_vec, bn_w, bn_b)


def tcn_block(state, blk):
    M, K, BSc = state.shape
    B, H = blk["w1"].shape
    P = blk["wd"].shape[0]
    kern = functools.partial(_tcn_block_kernel, blk["dilation"])
    return pl.pallas_call(
        kern,
        out_shape=jax.ShapeDtypeStruct((M, K, BSc), jnp.float32),
        grid=(M,),
        in_specs=[
            pl.BlockSpec((None, K, BSc), lambda m: (m, 0, 0)),
            pl.BlockSpec((B, H), lambda m: (0, 0)),
            pl.BlockSpec((P, H), lambda m: (0, 0)),
            pl.BlockSpec((H, BSc), lambda m: (0, 0)),
            pl.BlockSpec((6, H), lambda m: (0, 0)),
            pl.BlockSpec((1, BSc), lambda m: (0, 0)),
        ],
        out_specs=pl.BlockSpec((None, K, BSc), lambda m: (m, 0, 0)),
        compiler_params=pltpu.CompilerParams(dimension_semantics=("parallel",)),
    )(state, blk["w1"], blk["wd"], blk["wrs"], blk["hvec"], blk["brs"])


def mask_decode(state, enc, out_w, out_b, dec_w, C, B):
    M, K, N = enc.shape
    BSc = state.shape[2]
    Sc, NC = out_w.shape
    L = dec_w.shape[1]
    kern = functools.partial(_tail_kernel, C, B)
    return pl.pallas_call(
        kern,
        out_shape=jax.ShapeDtypeStruct((M, K, C * L), jnp.float32),
        grid=(M,),
        in_specs=[
            pl.BlockSpec((None, K, BSc), lambda m: (m, 0, 0)),
            pl.BlockSpec((None, K, N), lambda m: (m, 0, 0)),
            pl.BlockSpec((Sc, NC), lambda m: (0, 0)),
            pl.BlockSpec((1, NC), lambda m: (0, 0)),
            pl.BlockSpec((N, L), lambda m: (0, 0)),
        ],
        out_specs=pl.BlockSpec((None, K, C * L), lambda m: (m, 0, 0)),
        compiler_params=pltpu.CompilerParams(dimension_semantics=("parallel",)),
    )(state, enc, out_w, out_b, dec_w)


# --------------------------- parameters -------------------------------------

def init_params(key, cfg):
    """Random parameters, pre-packed for the fused kernels.

    Mapping to the PyTorch module:
      enc_w[l,n]   = encoder.conv1d_U.weight[n,0,l]
      ln_vec       = [LN.weight, LN.bias]             (GroupNorm(1, N))
      bn_w / bn_b  = BN (Conv1d(N, B, 1))
      per block:
        w1           = conv1d.weight.T, hvec rows = [b1, g1, be1, bd, g2, be2]
        wd[k,h]      = dconv1d.weight[h,0,k]          (depthwise)
        wrs / brs    = concat(pconv1d_res, pconv1d_skip) along Cout
      out_w / out_b  = out[1] (Conv1d(Sc, N*C, 1))
      dec_w[n,l]     = decoder.weight[n,0,l]          (ConvTranspose1d)
    """
    N, L, B, Sc = cfg["N"], cfg["L"], cfg["B"], cfg["Sc"]
    H, X, R, P, C = cfg["H"], cfg["X"], cfg["R"], cfg["P"], cfg["C"]
    keys = iter(jax.random.split(key, 4096))

    def w(shape, scale=0.1):
        return jax.random.normal(next(keys), shape, jnp.float32) * scale

    params = {
        "enc_w": w((L, N)),
        "ln_vec": jnp.stack([jnp.ones((N,), jnp.float32),
                             jnp.zeros((N,), jnp.float32)], axis=0),
        "bn_w": w((N, B)),
        "bn_b": w((1, B)),
        "tcn": [],
        "out_w": w((Sc, N * C)),
        "out_b": w((1, N * C)),
        "dec_w": w((N, L)),
    }
    for _r in range(R):
        for j in range(X):
            d = 2 ** j
            b1, bd = w((H,)), w((H,))
            g1 = jnp.ones((H,), jnp.float32)
            be1 = jnp.zeros((H,), jnp.float32)
            g2 = jnp.ones((H,), jnp.float32)
            be2 = jnp.zeros((H,), jnp.float32)
            params["tcn"].append({
                "dilation": d,
                "w1": w((B, H)),
                "wd": w((P, H)),
                "wrs": jnp.concatenate([w((H, B)), w((H, Sc))], axis=1),
                "hvec": jnp.stack([b1, g1, be1, bd, g2, be2], axis=0),
                "brs": jnp.concatenate([w((B,)), w((Sc,))]).reshape(1, B + Sc),
            })
    return params


# --------------------------- forward -----------------------------------------

def conv_tasnet_forward(x, params, cfg):
    """x: [M, T_in] float32 (matches pad_signal's 2-D input path)."""
    M, T_in = x.shape
    L, N, B, Sc, C = cfg["L"], cfg["N"], cfg["B"], cfg["Sc"], cfg["C"]
    hop = L // 2

    # ---- pad_signal (glue: pure zero-padding / concat) ----
    rest = L - (hop + T_in % L) % L
    xp = x
    if rest > 0:
        xp = jnp.concatenate([xp, jnp.zeros((M, rest), x.dtype)], axis=1)
    xp = jnp.concatenate(
        [jnp.zeros((M, hop), x.dtype), xp, jnp.zeros((M, hop), x.dtype)], axis=1)
    T_pad = xp.shape[1]                     # always an odd multiple of hop
    K = T_pad // hop - 1                    # number of encoder frames

    # ---- fused Encoder + gLN + bottleneck (frames built inside the kernel) --
    xf = xp.reshape(M, K + 1, hop)
    enc, state = encoder_bottleneck(xf, params["enc_w"], params["ln_vec"],
                                    params["bn_w"], params["bn_b"], Sc)
    # enc:   [M, K, N]      state: [M, K, B+Sc]  (= [out | skip_connection])

    # ---- TCN stack: one fused pallas_call per block ----
    for blk in params["tcn"]:
        state = tcn_block(state, blk)

    # ---- fused PReLU + output conv + sigmoid mask + decoder projection ----
    proj = mask_decode(state, enc, params["out_w"], params["out_b"],
                       params["dec_w"], C, B)            # [M, K, C*L]

    # ---- decoder overlap-add + crop (glue) ----
    proj = proj.reshape(M, K, C, L).transpose(0, 2, 1, 3).reshape(M * C, K, L)
    first = proj[:, :, :hop].reshape(M * C, K * hop)
    second = proj[:, :, hop:].reshape(M * C, K * hop)
    sig = (jnp.pad(first, ((0, 0), (0, hop)))
           + jnp.pad(second, ((0, 0), (hop, 0))))        # [M*C, (K+1)*hop]
    sig = sig[:, hop: sig.shape[1] - (rest + hop)]       # strip pad_signal pads
    return sig.reshape(M, C, -1)


# --------------------------- main --------------------------------------------

if __name__ == "__main__":
    # Small but structurally faithful hyperparameters:
    # N=16, L=8, B=8, Sc=8, H=16, X=2, R=2, P=3, C=2
    cfg = dict(N=16, L=8, B=8, Sc=8, H=16, X=2, R=2, P=3, C=2)

    key = jax.random.PRNGKey(0)
    kx, kp = jax.random.split(key)
    M, T_in = 2, 32
    x = jax.random.normal(kx, (M, T_in), jnp.float32)

    params = init_params(kp, cfg)
    out = conv_tasnet_forward(x, params, cfg)
    out = jax.block_until_ready(out)

    assert out.shape == (M, cfg["C"], T_in), out.shape
    assert jnp.all(jnp.isfinite(out))
    print("KERNEL_OK")
</pallas_src>

<mosaic_0001>
module attributes {stable_mosaic.version = 11 : i64} {
  func.func @_encoder_kernel(%arg0: i32, %arg1: memref<1x11x4xf32, #tpu.memory_space<vmem>>, %arg2: memref<8x16xf32, #tpu.memory_space<vmem>>, %arg3: memref<2x16xf32, #tpu.memory_space<vmem>>, %arg4: memref<16x8xf32, #tpu.memory_space<vmem>>, %arg5: memref<1x8xf32, #tpu.memory_space<vmem>>, %arg6: memref<1x10x16xf32, #tpu.memory_space<vmem>>, %arg7: memref<1x10x16xf32, #tpu.memory_space<vmem>>) attributes {dimension_semantics = [#tpu.dimension_semantics<parallel>], iteration_bounds = array<i64: 2>, scalar_prefetch = 0 : i64, scratch_operands = 0 : i64, tpu.core_type = #tpu.core_type<tc>, window_params = [{transform_indices = @transform_0, window_bounds = array<i64: 1, 11, 4>}, {pipeline_mode = #tpu.pipeline_mode<synchronous>, transform_indices = @transform_1, window_bounds = array<i64: 8, 16>}, {pipeline_mode = #tpu.pipeline_mode<synchronous>, transform_indices = @transform_2, window_bounds = array<i64: 2, 16>}, {pipeline_mode = #tpu.pipeline_mode<synchronous>, transform_indices = @transform_3, window_bounds = array<i64: 16, 8>}, {pipeline_mode = #tpu.pipeline_mode<synchronous>, transform_indices = @transform_4, window_bounds = array<i64: 1, 8>}, {transform_indices = @transform_5, window_bounds = array<i64: 1, 10, 16>}, {transform_indices = @transform_6, window_bounds = array<i64: 1, 10, 16>}]} {
    %c0 = arith.constant 0 : index
    %c0_0 = arith.constant 0 : index
    %c0_1 = arith.constant 0 : index
    %0 = vector.load %arg1[%c0, %c0_0, %c0_1] : memref<1x11x4xf32, #tpu.memory_space<vmem>>, vector<1x11x4xf32>
    %1 = vector.shape_cast %0 : vector<1x11x4xf32> to vector<11x4xf32>
    %2 = vector.extract_strided_slice %1 {offsets = [0, 0], sizes = [10, 4], strides = [1, 1]} : vector<11x4xf32> to vector<10x4xf32>
    %3 = vector.extract_strided_slice %1 {offsets = [1, 0], sizes = [10, 4], strides = [1, 1]} : vector<11x4xf32> to vector<10x4xf32>
    %4 = tpu.concatenate %2, %3 in 1 : vector<10x4xf32>, vector<10x4xf32> -> vector<10x8xf32>
    %c0_2 = arith.constant 0 : index
    %c0_3 = arith.constant 0 : index
    %5 = vector.load %arg2[%c0_2, %c0_3] : memref<8x16xf32, #tpu.memory_space<vmem>>, vector<8x16xf32>
    %cst = arith.constant dense<0.000000e+00> : vector<10x16xf32>
    %6 = tpu.matmul %4, %5, %cst {dimension_numbers = #tpu.dot_dimension_numbers<[1], [0], [0], [1], [0, 0, 1, 1], [], []>} : vector<10x8xf32>, vector<8x16xf32>, vector<10x16xf32> -> vector<10x16xf32>
    %cst_4 = arith.constant 0.000000e+00 : f32
    %7 = vector.broadcast %cst_4 : f32 to vector<10x16xf32>
    %8 = arith.maximumf %6, %7 : vector<10x16xf32>
    %c0_5 = arith.constant 0 : index
    %c0_6 = arith.constant 0 : index
    %c0_7 = arith.constant 0 : index
    %9 = vector.load %arg6[%c0_5, %c0_6, %c0_7] : memref<1x10x16xf32, #tpu.memory_space<vmem>>, vector<1x10x16xf32>
    %10 = vector.shape_cast %9 : vector<1x10x16xf32> to vector<10x16xf32>
    %11 = vector.shape_cast %8 : vector<10x16xf32> to vector<1x10x16xf32>
    tpu.vector_store %arg6[%c0_5, %c0_6, %c0_7], %11 {strides = array<i32>} : memref<1x10x16xf32, #tpu.memory_space<vmem>>, vector<1x10x16xf32>,
    %c0_8 = arith.constant 0 : index
    %c0_9 = arith.constant 0 : index
    %12 = vector.load %arg3[%c0_8, %c0_9] : memref<2x16xf32, #tpu.memory_space<vmem>>, vector<1x16xf32>
    %c1 = arith.constant 1 : index
    %c0_10 = arith.constant 0 : index
    %13 = vector.load %arg3[%c1, %c0_10] : memref<2x16xf32, #tpu.memory_space<vmem>>, vector<1x16xf32>
    %14 = vector.shape_cast %8 : vector<10x16xf32> to vector<1x10x16xf32>
    %cst_11 = arith.constant dense<0.000000e+00> : vector<1xf32>
    %15 = vector.multi_reduction <add>, %14, %cst_11 [1, 2] : vector<1x10x16xf32> to vector<1xf32>
    %16 = vector.shape_cast %15 : vector<1xf32> to vector<1x1x1xf32>
    %17 = vector.extract %16[0, 0, 0] : f32 from vector<1x1x1xf32>
    %cst_12 = arith.constant 1.600000e+02 : f32
    %18 = arith.divf %17, %cst_12 : f32
    %19 = vector.broadcast %18 : f32 to vector<10x16xf32>
    %20 = arith.subf %8, %19 : vector<10x16xf32>
    %21 = vector.broadcast %18 : f32 to vector<10x16xf32>
    %22 = arith.subf %8, %21 : vector<10x16xf32>
    %23 = arith.mulf %20, %22 : vector<10x16xf32>
    %24 = vector.shape_cast %23 : vector<10x16xf32> to vector<1x10x16xf32>
    %cst_13 = arith.constant dense<0.000000e+00> : vector<1xf32>
    %25 = vector.multi_reduction <add>, %24, %cst_13 [1, 2] : vector<1x10x16xf32> to vector<1xf32>
    %26 = vector.shape_cast %25 : vector<1xf32> to vector<1x1x1xf32>
    %27 = vector.extract %26[0, 0, 0] : f32 from vector<1x1x1xf32>
    %cst_14 = arith.constant 1.600000e+02 : f32
    %28 = arith.divf %27, %cst_14 : f32
    %29 = vector.broadcast %18 : f32 to vector<10x16xf32>
    %30 = arith.subf %8, %29 : vector<10x16xf32>
    %cst_15 = arith.constant 9.99999993E-9 : f32
    %31 = arith.addf %28, %cst_15 : f32
    %32 = math.rsqrt %31 : f32
    %33 = vector.broadcast %32 : f32 to vector<10x16xf32>
    %34 = arith.mulf %30, %33 : vector<10x16xf32>
    %35 = vector.broadcast %12 : vector<1x16xf32> to vector<10x16xf32>
    %36 = arith.mulf %34, %35 : vector<10x16xf32>
    %37 = vector.broadcast %13 : vector<1x16xf32> to vector<10x16xf32>
    %38 = arith.addf %36, %37 : vector<10x16xf32>
    %c0_16 = arith.constant 0 : index
    %c0_17 = arith.constant 0 : index
    %39 = vector.load %arg4[%c0_16, %c0_17] : memref<16x8xf32, #tpu.memory_space<vmem>>, vector<16x8xf32>
    %cst_18 = arith.constant dense<0.000000e+00> : vector<10x8xf32>
    %40 = tpu.matmul %38, %39, %cst_18 {dimension_numbers = #tpu.dot_dimension_numbers<[1], [0], [0], [1], [0, 0, 1, 1], [], []>} : vector<10x16xf32>, vector<16x8xf32>, vector<10x8xf32> -> vector<10x8xf32>
    %c0_19 = arith.constant 0 : index
    %c0_20 = arith.constant 0 : index
    %41 = vector.load %arg5[%c0_19, %c0_20] : memref<1x8xf32, #tpu.memory_space<vmem>>, vector<1x8xf32>
    %42 = vector.broadcast %41 : vector<1x8xf32> to vector<10x8xf32>
    %43 = arith.addf %40, %42 : vector<10x8xf32>
    %cst_21 = arith.constant 0.000000e+00 : f32
    %44 = vector.broadcast %cst_21 : f32 to vector<10x8xf32>
    %45 = tpu.concatenate %43, %44 in 1 : vector<10x8xf32>, vector<10x8xf32> -> vector<10x16xf32>
    %c0_22 = arith.constant 0 : index
    %c0_23 = arith.constant 0 : index
    %c0_24 = arith.constant 0 : index
    %46 = vector.load %arg7[%c0_22, %c0_23, %c0_24] : memref<1x10x16xf32, #tpu.memory_space<vmem>>, vector<1x10x16xf32>
    %47 = vector.shape_cast %46 : vector<1x10x16xf32> to vector<10x16xf32>
    %48 = vector.shape_cast %45 : vector<10x16xf32> to vector<1x10x16xf32>
    tpu.vector_store %arg7[%c0_22, %c0_23, %c0_24], %48 {strides = array<i32>} : memref<1x10x16xf32, #tpu.memory_space<vmem>>, vector<1x10x16xf32>,
    return
  }
  func.func @transform_0(%arg0: i32) -> (i32, i32, i32) {
    %c0_i32 = arith.constant 0 : i32
    %c0_i32_0 = arith.constant 0 : i32
    %c0_i32_1 = arith.constant 0 : i32
    return %arg0, %c0_i32, %c0_i32_0 : i32, i32, i32
  }
  func.func @transform_1(%arg0: i32) -> (i32, i32) {
    %c0_i32 = arith.constant 0 : i32
    %c0_i32_0 = arith.constant 0 : i32
    %c0_i32_1 = arith.constant 0 : i32
    return %c0_i32, %c0_i32_0 : i32, i32
  }
  func.func @transform_2(%arg0: i32) -> (i32, i32) {
    %c0_i32 = arith.constant 0 : i32
    %c0_i32_0 = arith.constant 0 : i32
    %c0_i32_1 = arith.constant 0 : i32
    return %c0_i32, %c0_i32_0 : i32, i32
  }
  func.func @transform_3(%arg0: i32) -> (i32, i32) {
    %c0_i32 = arith.constant 0 : i32
    %c0_i32_0 = arith.constant 0 : i32
    %c0_i32_1 = arith.constant 0 : i32
    return %c0_i32, %c0_i32_0 : i32, i32
  }
  func.func @transform_4(%arg0: i32) -> (i32, i32) {
    %c0_i32 = arith.constant 0 : i32
    %c0_i32_0 = arith.constant 0 : i32
    %c0_i32_1 = arith.constant 0 : i32
    return %c0_i32, %c0_i32_0 : i32, i32
  }
  func.func @transform_5(%arg0: i32) -> (i32, i32, i32) {
    %c0_i32 = arith.constant 0 : i32
    %c0_i32_0 = arith.constant 0 : i32
    %c0_i32_1 = arith.constant 0 : i32
    return %arg0, %c0_i32, %c0_i32_0 : i32, i32, i32
  }
  func.func @transform_6(%arg0: i32) -> (i32, i32, i32) {
    %c0_i32 = arith.constant 0 : i32
    %c0_i32_0 = arith.constant 0 : i32
    %c0_i32_1 = arith.constant 0 : i32
    return %arg0, %c0_i32, %c0_i32_0 : i32, i32, i32
  }
}

</mosaic_0001>

<bundles_post_ra>
// kernel: tpu_custom_call.1
= control target key start
LH: loop header
LB: loop body
LE: loop exit
PB: predicated region body
PF: predicated region fallthrough
CT: control target
= control target key end

     0   :  { %s712_s21 = smov 0   ;;  %s769_s0 = inlined_call_operand.vmem [shape: f32[2,11,4], index: 0, kind: input, shape index: {}]   ;;  %s770_s1 = inlined_call_operand.vmem [shape: f32[8,16], index: 1, kind: input, shape index: {}]   ;;  %s771_s2 = inlined_call_operand.vmem [shape: f32[2,16], index: 2, kind: input, shape index: {}]   ;;  %s772_s3 = inlined_call_operand.vmem [shape: f32[16,8], index: 3, kind: input, shape index: {}]   ;;  %s773_s4 = inlined_call_operand.vmem [shape: f32[1,8], index: 4, kind: input, shape index: {}]   ;;  %s774_s5 = inlined_call_operand.vmem [shape: f32[2,10,16], index: 5, kind: output, shape index: {0}]   ;;  %s775_s6 = inlined_call_operand.vmem [shape: f32[2,10,16], index: 6, kind: output, shape index: {1}]  }
   0x1 LB: > { %s609_s22 = sadd.s32 4294967295, %s674_s21   ;;  %p613_p0 = scmp.ge.s32.totalorder %s674_s21, 1  ;;  %s674_s21 = sphi %s712_s21, %s17_s21  }
   0x2   : > { %p215_p1 = scmp.lt.s32.totalorder %s674_s21, 3 }
   0x4   : > { %p216_p2 = pnand %p613_p0, %p215_p1 }
   0x5   : > { %p250_p3 = scmp.lt.s32.totalorder (!%p216_p2), %s609_s22, 1  ;;  %s676_s29 = smov (!%p216_p2), 4  }
   0x6   : > { %219 = sbr.rel (%p216_p2) target bundleno = 1024 (0x400), region = 40 }
   0xb   : > { %v282_v0 = vld [vmem:[%s770_s1] sm:$0xff]  ;;  %s777_s22 = smov (!%p250_p3, %s609_s22), 1  ;;  %vm269_vm0 = vcmask 1046528   ;;  %vm279_vm1 = vcmask 31744   ;;  %vm283_vm2 = vcmask 64512   ;;  %vm369_vm3 = vcmask 123904  }
   0xc   : > { %639 = vmatprep.subr.mxu0 %v282_v0  ;;  %s723_s25 = sshll.u32 %s777_s22, 4  ;;  %vm367_vm4 = vcmask 130048   ;;  %v428_v37 = vld [vmem:[%s772_s3 + $0x8] sm:$0xff]  ;;  %v427_v38 = vld [vmem:[%s772_s3] sm:$0xff] }
   0xd   : > { %640 = vmatpush3.msra.mxu0 %v282_v0  ;;  %s254_s28 = scalar_lea.vmem %s769_s0, %s723_s25  ;;  %s259_s8 = scalar_lea.vmem %s774_s5, %s723_s25  ;;  %644 = vmatprep.subr.mxu1 %v428_v37  ;;  %v622_v43 = vld [vmem:[%s771_s2] ss:$0 sm:$0xff]  ;;  %v623_v47 = vld [vmem:[%s771_s2 + $0x1] ss:$0 sm:$0xff] }
   0xe   : > { %v265_v1 = vld [vmem:[%s254_s28] sm:$0xff]  ;;  %v266_v2 = vld [vmem:[%s254_s28 + $0x8] sm:$0x7]  ;;  %645 = vmatpush3.msra.mxu1 %v428_v37 }
   0xf   : > { %v270_v3 = vrot.slane %v265_v1, 1  ;;  %v271_v4 = vrot.slane %v266_v2, 1  ;;  %646 = vmatprep.subr.mxu1 %v427_v38  ;;  %v624_v52 = vld [vmem:[%s773_s4] ss:$0 sm:$0xff] }
  0x10   : > { %647 = vmatpush3.msra.mxu1 %v427_v38 }
  0x11   : > { %v272_v5 = vsel %vm269_vm0, %v270_v3, %v271_v4 }
  0x12   : > { %273 = vrot.lane.b32.xlu0 %v272_v5, %s676_s29 }
  0x16   : > { %275 = vrot.lane.b32.xlu0 %v271_v4, %s676_s29  ;;  %s264_s29 = scalar_lea.vmem %s775_s6, %s723_s25 }
  0x84   : > { %v274_v6 = vpop.permute.xlu0 %273 }
  0x85   : > { %v280_v7 = vsel %vm279_vm1, %v265_v1, %v274_v6 }
  0x86   : > { %641 = vmatprep.mubr.msk.f32.mxu0 %vm283_vm2, %v280_v7 }
  0x88   : > { %v276_v8 = vpop.permute.xlu0 %275 }
  0x89   : > { %v281_v9 = vsel %vm279_vm1, %v266_v2, %v276_v8 }
  0x8a   : > { %642 = vmatmul.mubr.msk.f32.vlgmr.msra.gmra.mxu0 %vm283_vm2, %v281_v9 }
 0x14a   : > { %v643_v10 = vpop.f32.mrf.mxu0 }
 0x14b   : > { %v366_v11 = vmax.f32 %v643_v10, 0.0 }
 0x14c   : > { %v356_v12 = vpop.f32.mrf.mxu0 }
 0x14d   : > { %370 = vst.msk [vmem:[%s259_s8 + $0x8] sm:$0x3] %vm369_vm3, %v366_v11  ;;  %v365_v13 = vmax.f32 %v356_v12, 0.0  ;;  %v374_v15 = vsel %vm369_vm3, %v366_v11, 0.0 }
 0x14f   : > { %368 = vst.msk [vmem:[%s259_s8] sm:$0xff] %vm367_vm4, %v365_v13  ;;  %v373_v14 = vsel %vm367_vm4, %v365_v13, 0.0 }
 0x150   : > { %v375_v16 = vadd.f32 %v374_v15, %v373_v14 }
 0x152   : > { %376 = vadd.xlane.f32.xlu1 %v375_v16 }
 0x1db   : > { %v377_v17 = vpop.xlane.xlu1 %376 }
 0x1dc   : > { %v378_v18 = vrot.slane %v377_v17, 4 }
 0x1de   : > { %v379_v19 = vadd.f32 %v378_v18, %v377_v17 }
 0x1e0   : > { %v380_v20 = vrot.slane %v379_v19, 2 }
 0x1e2   : > { %v381_v21 = vadd.f32 %v380_v20, %v379_v19 }
 0x1e4   : > { %v382_v22 = vrot.slane %v381_v21, 1 }
 0x1e6   : > { %v383_v23 = vadd.f32 %v382_v22, %v381_v21 }
 0x1e8   : > { %651 = vpush %v383_v23 }
 0x219   : > { %s652_s9 = spop %651 }
 0x21a   : > { %s387_s10 = smul.f32 0.00625, %s652_s9 }
 0x21c   : > { %v388_v24 = vstv %s387_s10 }
 0x21d   : > { %v389_v25 = vsub.f32 %v365_v13, %v388_v24  ;;  %v390_v26 = vsub.f32 %v366_v11, %v388_v24 }
 0x21f   : > { %v391_v27 = vmul.f32 %v389_v25, %v389_v25  ;;  %v392_v28 = vmul.f32 %v390_v26, %v390_v26 }
 0x221   : > { %v393_v29 = vsel %vm367_vm4, %v391_v27, 0.0  ;;  %v394_v30 = vsel %vm369_vm3, %v392_v28, 0.0 }
 0x222   : > { %v395_v31 = vadd.f32 %v394_v30, %v393_v29 }
 0x224   : > { %396 = vadd.xlane.f32.xlu1 %v395_v31 }
 0x2ad   : > { %v397_v32 = vpop.xlane.xlu1 %396 }
 0x2ae   : > { %v398_v33 = vrot.slane %v397_v32, 4 }
 0x2b0   : > { %v399_v34 = vadd.f32 %v398_v33, %v397_v32 }
 0x2b2   : > { %v400_v35 = vrot.slane %v399_v34, 2 }
 0x2b4   : > { %v401_v36 = vadd.f32 %v400_v35, %v399_v34 }
 0x2b6   : > { %v402_v39 = vrot.slane %v401_v36, 1 }
 0x2b8   : > { %v403_v40 = vadd.f32 %v402_v39, %v401_v36 }
 0x2ba   : > { %653 = vpush %v403_v40 }
 0x2eb   : > { %s654_s15 = spop %653 }
 0x2ec   : > { %s407_s16 = smul.f32 0.00625, %s654_s15 }
 0x2ee   : > { %s408_s17 = sadd.f32 1e-08, %s407_s16 }
 0x2f0   : > { %v409_v41 = vstv %s408_s17 }
 0x2f1   : > { %666 = vrsqrt.f32 %v409_v41 }
 0x2fe   : > { %v667_v42 = vpop.eup %666 }
 0x2ff   : > { %655 = vpush %v667_v42 }
 0x330   : > { %s656_s18 = spop %655 }
 0x331   : > { %v412_v44 = vstv %s656_s18 }
 0x332   : > { %v413_v45 = vmul.f32 %v412_v44, %v389_v25  ;;  %v414_v46 = vmul.f32 %v412_v44, %v390_v26 }
 0x334   : > { %v419_v48 = vmul.f32 %v622_v43, %v413_v45  ;;  %v420_v49 = vmul.f32 %v622_v43, %v414_v46 }
 0x336   : > { %v425_v50 = vadd.f32 %v623_v47, %v419_v48  ;;  %v426_v51 = vadd.f32 %v623_v47, %v420_v49 }
 0x338   : > { %648 = vmatprep.mubr.msk.f32.mxu1 %vm367_vm4, %v425_v50 }
 0x339   : > { %649 = vmatmul.mubr.msk.f32.vlgmr.msra.gmra.mxu1 %vm367_vm4, %v426_v51 }
 0x3f9   : > { %v650_v53 = vpop.f32.mrf.mxu1 }
 0x3fa   : > { %v514_v54 = vadd.f32 %v650_v53, %v624_v52 }
 0x3fb   : > { %v508_v55 = vpop.f32.mrf.mxu1 }
 0x3fc   : > { %v518_v56 = vsel %vm283_vm2, %v514_v54, 0.0  ;;  %v509_v57 = vadd.f32 %v624_v52, %v508_v55 }
 0x3fd   : > { %520 = vst.msk [vmem:[%s264_s29 + $0x8] sm:$0x3] %vm369_vm3, %v518_v56 }
 0x3fe   : > { %v517_v58 = vsel %vm283_vm2, %v509_v57, 0.0 }
 0x3ff   : > { %519 = vst.msk [vmem:[%s264_s29] sm:$0xff] %vm367_vm4, %v517_v58 }
 0x400 PF: > { %s17_s21 = sadd.s32 1, %s674_s21  }
 0x401   : > { %p14_p4 = scmp.ge.s32.totalorder %s17_s21, 4  }
 0x403   :  { %16 = sbr.rel (!%p14_p4) target bundleno = 1 (0x1), region = 82 }

</bundles_post_ra>
